<compile_context>
chip_gen: v7x
topology: tpu7x:2x2x1
jax: 0.10.0
libtpu: 0.0.40
codegen_flags: <defaults>
</compile_context>

<pallas_src>
import functools
import math

import jax
import jax.numpy as jnp
from jax import lax
from jax.experimental import pallas as pl
from jax.experimental.pallas import tpu as pltpu


# ----------------------------- shared in-kernel helpers -----------------------------

def _layer_norm(z, gamma, beta, eps):
    mean = jnp.mean(z, axis=-1, keepdims=True)
    zc = z - mean
    var = jnp.mean(zc * zc, axis=-1, keepdims=True)     # biased var (PyTorch LayerNorm)
    return zc * lax.rsqrt(var + eps) * gamma + beta


def _attention_core(q, k, v, wo_ref, *, num_heads, causal, compute_dtype, approx_recip):
    """q/k/v: (S*, D) f32 projections (q already scaled). Returns (Sq, D) f32 ctx @ Wo."""
    Sq, D = q.shape
    Skv = k.shape[0]
    dh = D // num_heads

    if causal:
        row = lax.broadcasted_iota(jnp.int32, (Sq, Skv), 0)
        col = lax.broadcasted_iota(jnp.int32, (Sq, Skv), 1)
        keep = col <= row                               # dec_valid_lens = [1..Sq] per row

    ctx_parts = []
    for h in range(num_heads):                          # few heads -> static unroll
        qh = q[:, h * dh:(h + 1) * dh].astype(compute_dtype)
        kh = k[:, h * dh:(h + 1) * dh].astype(compute_dtype)
        vh = v[:, h * dh:(h + 1) * dh].astype(compute_dtype)
        # q @ k.T without materializing the transpose (contract on last dims).
        s = lax.dot_general(qh, kh, (((1,), (1,)), ((), ())),
                            preferred_element_type=jnp.float32)
        if causal:
            s = jnp.where(keep, s, -1e6)                # d2l masked_softmax fill value
        s = s - jnp.max(s, axis=-1, keepdims=True)      # softmax stats stay in f32
        p = jnp.exp(s)
        l = jnp.sum(p, axis=-1, keepdims=True)
        p = p * pl.reciprocal(l, approx=approx_recip)
        ctx_parts.append(jnp.dot(p.astype(compute_dtype), vh,
                                 preferred_element_type=jnp.float32))
    # Single wide (K=D) output projection instead of per-head K=dh accumulation.
    ctx = jnp.concatenate(ctx_parts, axis=-1)           # (Sq, D)
    return jnp.dot(ctx.astype(compute_dtype), wo_ref[...],
                   preferred_element_type=jnp.float32)


# ------------------- fused self-attention (causal) + AddNorm1 kernel -----------------

def self_attn_addnorm_kernel(x_ref, wqkv_ref, wo_ref, g_ref, b_ref, o_ref,
                             *, num_heads, eps, compute_dtype, approx_recip):
    x = x_ref[0]                                        # (S, D) f32, also the residual
    S, D = x.shape
    dh = D // num_heads
    qkv = jnp.dot(x.astype(compute_dtype), wqkv_ref[...],
                  preferred_element_type=jnp.float32)   # fused Q|K|V projection
    q = qkv[:, :D] * (1.0 / math.sqrt(dh))              # fold scale into q (tq x D mults)
    k = qkv[:, D:2 * D]
    v = qkv[:, 2 * D:]
    attn = _attention_core(q, k, v, wo_ref, num_heads=num_heads, causal=True,
                           compute_dtype=compute_dtype, approx_recip=approx_recip)
    z = attn + x                                        # dropout(p=0) is identity
    o_ref[0] = _layer_norm(z, g_ref[...], b_ref[...], eps).astype(o_ref.dtype)


def self_attention_add_norm(x, wq, wk, wv, wo, gamma, beta, *,
                            num_heads, eps=1e-5, compute_dtype=jnp.float32):
    B, S, D = x.shape
    wqkv = jnp.concatenate([wq, wk, wv], axis=1).astype(compute_dtype)   # (D, 3D)
    wo_c = wo.astype(compute_dtype)
    approx = compute_dtype != jnp.float32
    wbytes = jnp.dtype(compute_dtype).itemsize
    cost = pl.CostEstimate(
        flops=B * (2 * S * D * 3 * D + 4 * S * S * D + 2 * S * D * D),
        transcendentals=B * num_heads * S * S,
        bytes_accessed=4 * (2 * B * S * D + 2 * D) + wbytes * (3 * D * D + D * D))
    kernel = functools.partial(self_attn_addnorm_kernel, num_heads=num_heads, eps=eps,
                               compute_dtype=compute_dtype, approx_recip=approx)
    return pl.pallas_call(
        kernel,
        out_shape=jax.ShapeDtypeStruct((B, S, D), x.dtype),
        grid_spec=pl.GridSpec(
            grid=(B,),
            in_specs=[
                pl.BlockSpec((1, S, D), lambda b: (b, 0, 0)),
                pl.BlockSpec((D, 3 * D), lambda b: (0, 0)),  # weights resident in VMEM
                pl.BlockSpec((D, D), lambda b: (0, 0)),
                pl.BlockSpec((1, D), lambda b: (0, 0)),
                pl.BlockSpec((1, D), lambda b: (0, 0)),
            ],
            out_specs=pl.BlockSpec((1, S, D), lambda b: (b, 0, 0)),
        ),
        compiler_params=pltpu.CompilerParams(dimension_semantics=("parallel",)),
        cost_estimate=cost,
    )(x, wqkv, wo_c, gamma.reshape(1, D), beta.reshape(1, D))


# --------------------- fused cross-attention + AddNorm2 kernel ------------------------

def cross_attn_addnorm_kernel(xq_ref, xkv_ref, wq_ref, wkv_ref, wo_ref, g_ref, b_ref,
                              o_ref, *, num_heads, eps, compute_dtype, approx_recip):
    xq = xq_ref[0]                                      # (Sq, D) f32, also the residual
    xkv = xkv_ref[0]                                    # (Skv, D) f32 (encoder outputs)
    D = xq.shape[1]
    dh = D // num_heads
    q = jnp.dot(xq.astype(compute_dtype), wq_ref[...],
                preferred_element_type=jnp.float32) * (1.0 / math.sqrt(dh))
    kv = jnp.dot(xkv.astype(compute_dtype), wkv_ref[...],
                 preferred_element_type=jnp.float32)    # fused K|V projection
    k = kv[:, :D]
    v = kv[:, D:]
    attn = _attention_core(q, k, v, wo_ref, num_heads=num_heads, causal=False,
                           compute_dtype=compute_dtype, approx_recip=approx_recip)
    z = attn + xq
    o_ref[0] = _layer_norm(z, g_ref[...], b_ref[...], eps).astype(o_ref.dtype)


def cross_attention_add_norm(xq, xkv, wq, wk, wv, wo, gamma, beta, *,
                             num_heads, eps=1e-5, compute_dtype=jnp.float32):
    B, Sq, D = xq.shape
    Skv = xkv.shape[1]
    wkv = jnp.concatenate([wk, wv], axis=1).astype(compute_dtype)        # (D, 2D)
    wq_c = wq.astype(compute_dtype)
    wo_c = wo.astype(compute_dtype)
    approx = compute_dtype != jnp.float32
    wbytes = jnp.dtype(compute_dtype).itemsize
    cost = pl.CostEstimate(
        flops=B * (2 * Sq * D * D + 2 * Skv * D * 2 * D + 4 * Sq * Skv * D
                   + 2 * Sq * D * D),
        transcendentals=B * num_heads * Sq * Skv,
        bytes_accessed=4 * (2 * B * Sq * D + B * Skv * D + 2 * D)
                       + wbytes * (D * D + 2 * D * D + D * D))
    kernel = functools.partial(cross_attn_addnorm_kernel, num_heads=num_heads, eps=eps,
                               compute_dtype=compute_dtype, approx_recip=approx)
    return pl.pallas_call(
        kernel,
        out_shape=jax.ShapeDtypeStruct((B, Sq, D), xq.dtype),
        grid_spec=pl.GridSpec(
            grid=(B,),
            in_specs=[
                pl.BlockSpec((1, Sq, D), lambda b: (b, 0, 0)),
                pl.BlockSpec((1, Skv, D), lambda b: (b, 0, 0)),
                pl.BlockSpec((D, D), lambda b: (0, 0)),      # weights resident in VMEM
                pl.BlockSpec((D, 2 * D), lambda b: (0, 0)),
                pl.BlockSpec((D, D), lambda b: (0, 0)),
                pl.BlockSpec((1, D), lambda b: (0, 0)),
                pl.BlockSpec((1, D), lambda b: (0, 0)),
            ],
            out_specs=pl.BlockSpec((1, Sq, D), lambda b: (b, 0, 0)),
        ),
        compiler_params=pltpu.CompilerParams(dimension_semantics=("parallel",)),
        cost_estimate=cost,
    )(xq, xkv, wq_c, wkv, wo_c, gamma.reshape(1, D), beta.reshape(1, D))


# ----------------------------- fused FFN + AddNorm3 kernel ----------------------------

def ffn_addnorm_kernel(x_ref, w1_ref, b1_ref, w2_ref, b2_ref, g_ref, bt_ref, o_ref,
                       *, eps, compute_dtype):
    x = x_ref[...]                                      # (tm, D) f32, also the residual
    h = jnp.dot(x.astype(compute_dtype), w1_ref[...],
                preferred_element_type=jnp.float32)
    h = jnp.maximum(h + b1_ref[...], 0.0)               # f32 bias add + ReLU (VPU)
    f = jnp.dot(h.astype(compute_dtype), w2_ref[...],
                preferred_element_type=jnp.float32) + b2_ref[...]
    z = f + x                                           # dropout(p=0) is identity
    o_ref[...] = _layer_norm(z, g_ref[...], bt_ref[...], eps).astype(o_ref.dtype)


def ffn_add_norm(x, w1, b1, w2, b2, gamma, beta, *, tm=512, eps=1e-5,
                 compute_dtype=jnp.float32):
    B, S, d_in = x.shape
    H = w1.shape[1]
    d_out = w2.shape[1]
    M = B * S
    tm = min(tm, M)
    wbytes = jnp.dtype(compute_dtype).itemsize
    # TODO(synk): if H/d_in grow (or on v7x's 64 MiB VMEM), add a K-reduction grid axis
    #             with an f32 acc scratch instead of keeping full W1/W2 resident.
    cost = pl.CostEstimate(
        flops=2 * M * d_in * H + 2 * M * H * d_out,
        transcendentals=0,
        bytes_accessed=4 * (2 * M * d_in + H + d_out + 2 * d_out)
                       + wbytes * (d_in * H + H * d_out))
    out = pl.pallas_call(
        functools.partial(ffn_addnorm_kernel, eps=eps, compute_dtype=compute_dtype),
        out_shape=jax.ShapeDtypeStruct((M, d_out), x.dtype),
        grid_spec=pl.GridSpec(
            grid=(pl.cdiv(M, tm),),                     # token tiles -> DMA/compute overlap
            in_specs=[
                pl.BlockSpec((tm, d_in), lambda i: (i, 0)),
                pl.BlockSpec((d_in, H), lambda i: (0, 0)),   # weights resident in VMEM
                pl.BlockSpec((1, H), lambda i: (0, 0)),
                pl.BlockSpec((H, d_out), lambda i: (0, 0)),
                pl.BlockSpec((1, d_out), lambda i: (0, 0)),
                pl.BlockSpec((1, d_out), lambda i: (0, 0)),
                pl.BlockSpec((1, d_out), lambda i: (0, 0)),
            ],
            out_specs=pl.BlockSpec((tm, d_out), lambda i: (i, 0)),
        ),
        compiler_params=pltpu.CompilerParams(dimension_semantics=("parallel",)),
        cost_estimate=cost,
    )(x.reshape(M, d_in), w1.astype(compute_dtype), b1.reshape(1, H),
      w2.astype(compute_dtype), b2.reshape(1, d_out),
      gamma.reshape(1, d_out), beta.reshape(1, d_out))
    return out.reshape(B, S, d_out)


# ------------------------------------ DecoderBlock ------------------------------------

def decoder_block(X, enc_outputs, params, *, num_heads, tm=512,
                  compute_dtype=jnp.float32):
    """First call (state[2][i] is None), training mode: key_values = X, causal mask.
    Returns (block_output, new_cached_key_values)."""
    key_values = X
    Y = self_attention_add_norm(X, *params["attn1"], *params["ln1"],
                                num_heads=num_heads, compute_dtype=compute_dtype)
    Z = cross_attention_add_norm(Y, enc_outputs, *params["attn2"], *params["ln2"],
                                 num_heads=num_heads, compute_dtype=compute_dtype)
    out = ffn_add_norm(Z, *params["ffn"], *params["ln3"], tm=tm,
                       compute_dtype=compute_dtype)
    return out, key_values


# --------------------------------- pure-JAX reference ----------------------------------

def ref_mha(xq, xkv, wq, wk, wv, wo, num_heads, causal):
    B, Sq, D = xq.shape
    Skv = xkv.shape[1]
    dh = D // num_heads
    scale = 1.0 / math.sqrt(dh)
    q = (xq @ wq).reshape(B, Sq, num_heads, dh).transpose(0, 2, 1, 3)
    k = (xkv @ wk).reshape(B, Skv, num_heads, dh).transpose(0, 2, 1, 3)
    v = (xkv @ wv).reshape(B, Skv, num_heads, dh).transpose(0, 2, 1, 3)
    s = jnp.einsum("bhqd,bhkd->bhqk", q, k) * scale
    if causal:
        keep = jnp.arange(Skv)[None, :] <= jnp.arange(Sq)[:, None]
        s = jnp.where(keep[None, None], s, -1e6)
    p = jax.nn.softmax(s, axis=-1)
    ctx = jnp.einsum("bhqk,bhkd->bhqd", p, v).transpose(0, 2, 1, 3).reshape(B, Sq, D)
    return ctx @ wo


def ref_add_norm(x, y, gamma, beta, eps=1e-5):
    z = x + y
    m = z.mean(-1, keepdims=True)
    v = ((z - m) ** 2).mean(-1, keepdims=True)
    return (z - m) * lax.rsqrt(v + eps) * gamma + beta


def ref_ffn(x, w1, b1, w2, b2):
    return jnp.maximum(x @ w1 + b1, 0.0) @ w2 + b2


def ref_decoder_block(X, enc, params, num_heads):
    X2 = ref_mha(X, X, *params["attn1"], num_heads, True)
    Y = ref_add_norm(X, X2, *params["ln1"])
    Y2 = ref_mha(Y, enc, *params["attn2"], num_heads, False)
    Z = ref_add_norm(Y, Y2, *params["ln2"])
    return ref_add_norm(Z, ref_ffn(Z, *params["ffn"]), *params["ln3"])


# --------------------------------------- demo ------------------------------------------

def init_linear(key, fan_in, fan_out, bias=True):
    kw, kb = jax.random.split(key)
    bound = 1.0 / math.sqrt(fan_in)
    w = jax.random.uniform(kw, (fan_in, fan_out), jnp.float32, -bound, bound)
    if bias:
        b = jax.random.uniform(kb, (fan_out,), jnp.float32, -bound, bound)
        return w, b
    return w


if __name__ == "__main__":
    batch, seq, seq_enc = 2, 8, 8
    num_hiddens, num_heads = 32, 4        # norm_shape = [32]
    ffn_num_input, ffn_num_hiddens = 32, 64

    key = jax.random.PRNGKey(0)
    keys = jax.random.split(key, 9)
    X = jax.random.normal(keys[0], (batch, seq, num_hiddens), jnp.float32)
    enc_outputs = jax.random.normal(keys[1], (batch, seq_enc, num_hiddens), jnp.float32)

    def attn_params(k):
        return tuple(init_linear(kk, num_hiddens, num_hiddens, bias=False)
                     for kk in jax.random.split(k, 4))

    def ln_params(k):
        kg, kb = jax.random.split(k)
        gamma = 1.0 + 0.1 * jax.random.normal(kg, (num_hiddens,), jnp.float32)
        beta = 0.1 * jax.random.normal(kb, (num_hiddens,), jnp.float32)
        return gamma, beta

    params = {
        "attn1": attn_params(keys[2]),
        "ln1": ln_params(keys[3]),
        "attn2": attn_params(keys[4]),
        "ln2": ln_params(keys[5]),
        "ffn": (*init_linear(keys[6], ffn_num_input, ffn_num_hiddens),
                *init_linear(keys[7], ffn_num_hiddens, num_hiddens)),
        "ln3": ln_params(keys[8]),
    }

    ref = ref_decoder_block(X, enc_outputs, params, num_heads)

    # f32 MXU path (tight tolerance). tm=8 exercises a real multi-step pipelined grid.
    out, kv = decoder_block(X, enc_outputs, params, num_heads=num_heads, tm=8)
    jax.block_until_ready(out)
    assert out.shape == (batch, seq, num_hiddens)
    assert jnp.allclose(out, ref, atol=1e-4, rtol=1e-4), \
        float(jnp.max(jnp.abs(out - ref)))
    assert jnp.allclose(kv, X)

    # bf16 MXU-operand path (production setting for v6e/v7x): f32 softmax/LayerNorm
    # statistics, f32 accumulation, loose tolerance vs the f32 reference.
    out_bf16, _ = decoder_block(X, enc_outputs, params, num_heads=num_heads, tm=8,
                                compute_dtype=jnp.bfloat16)
    jax.block_until_ready(out_bf16)
    assert out_bf16.shape == (batch, seq, num_hiddens)
    assert bool(jnp.all(jnp.isfinite(out_bf16)))
    assert jnp.allclose(out_bf16, ref, atol=0.2, rtol=0.2), \
        float(jnp.max(jnp.abs(out_bf16 - ref)))

    print("KERNEL_OK")
</pallas_src>

<mosaic_0001>
module attributes {stable_mosaic.version = 11 : i64} {
  func.func @self_attn_addnorm_kernel(%arg0: i32, %arg1: memref<1x8x32xf32, #tpu.memory_space<vmem>>, %arg2: memref<32x96xf32, #tpu.memory_space<vmem>>, %arg3: memref<32x32xf32, #tpu.memory_space<vmem>>, %arg4: memref<1x32xf32, #tpu.memory_space<vmem>>, %arg5: memref<1x32xf32, #tpu.memory_space<vmem>>, %arg6: memref<1x8x32xf32, #tpu.memory_space<vmem>>) attributes {dimension_semantics = [#tpu.dimension_semantics<parallel>], iteration_bounds = array<i64: 2>, scalar_prefetch = 0 : i64, scratch_operands = 0 : i64, tpu.core_type = #tpu.core_type<tc>, window_params = [{transform_indices = @transform_0, window_bounds = array<i64: 1, 8, 32>}, {pipeline_mode = #tpu.pipeline_mode<synchronous>, transform_indices = @transform_1, window_bounds = array<i64: 32, 96>}, {pipeline_mode = #tpu.pipeline_mode<synchronous>, transform_indices = @transform_2, window_bounds = array<i64: 32, 32>}, {pipeline_mode = #tpu.pipeline_mode<synchronous>, transform_indices = @transform_3, window_bounds = array<i64: 1, 32>}, {pipeline_mode = #tpu.pipeline_mode<synchronous>, transform_indices = @transform_4, window_bounds = array<i64: 1, 32>}, {transform_indices = @transform_5, window_bounds = array<i64: 1, 8, 32>}]} {
    %c0 = arith.constant 0 : index
    %c0_0 = arith.constant 0 : index
    %c0_1 = arith.constant 0 : index
    %0 = vector.load %arg1[%c0, %c0_0, %c0_1] : memref<1x8x32xf32, #tpu.memory_space<vmem>>, vector<1x8x32xf32>
    %1 = vector.shape_cast %0 : vector<1x8x32xf32> to vector<8x32xf32>
    %c0_2 = arith.constant 0 : index
    %c0_3 = arith.constant 0 : index
    %2 = vector.load %arg2[%c0_2, %c0_3] : memref<32x96xf32, #tpu.memory_space<vmem>>, vector<32x96xf32>
    %cst = arith.constant dense<0.000000e+00> : vector<8x96xf32>
    %3 = tpu.matmul %1, %2, %cst {dimension_numbers = #tpu.dot_dimension_numbers<[1], [0], [0], [1], [0, 0, 1, 1], [], []>} : vector<8x32xf32>, vector<32x96xf32>, vector<8x96xf32> -> vector<8x96xf32>
    %4 = vector.extract_strided_slice %3 {offsets = [0, 0], sizes = [8, 32], strides = [1, 1]} : vector<8x96xf32> to vector<8x32xf32>
    %cst_4 = arith.constant 0.353553385 : f32
    %5 = vector.broadcast %cst_4 : f32 to vector<8x32xf32>
    %6 = arith.mulf %4, %5 : vector<8x32xf32>
    %7 = vector.extract_strided_slice %3 {offsets = [0, 32], sizes = [8, 32], strides = [1, 1]} : vector<8x96xf32> to vector<8x32xf32>
    %8 = vector.extract_strided_slice %3 {offsets = [0, 64], sizes = [8, 32], strides = [1, 1]} : vector<8x96xf32> to vector<8x32xf32>
    %9 = tpu.iota {dimensions = array<i32: 0>} : vector<8x8xi32>
    %10 = tpu.iota {dimensions = array<i32: 1>} : vector<8x8xi32>
    %11 = arith.cmpi sle, %10, %9 : vector<8x8xi32>
    %12 = vector.extract_strided_slice %6 {offsets = [0, 0], sizes = [8, 8], strides = [1, 1]} : vector<8x32xf32> to vector<8x8xf32>
    %13 = vector.extract_strided_slice %7 {offsets = [0, 0], sizes = [8, 8], strides = [1, 1]} : vector<8x32xf32> to vector<8x8xf32>
    %14 = vector.extract_strided_slice %8 {offsets = [0, 0], sizes = [8, 8], strides = [1, 1]} : vector<8x32xf32> to vector<8x8xf32>
    %cst_5 = arith.constant dense<0.000000e+00> : vector<8x8xf32>
    %15 = tpu.matmul %12, %13, %cst_5 {dimension_numbers = #tpu.dot_dimension_numbers<[1], [1], [0], [0], [0, 0, 1, 0], [], []>} : vector<8x8xf32>, vector<8x8xf32>, vector<8x8xf32> -> vector<8x8xf32>
    %cst_6 = arith.constant -1.000000e+06 : f32
    %16 = vector.broadcast %cst_6 : f32 to vector<8x8xf32>
    %17 = arith.select %11, %15, %16 : vector<8x8xi1>, vector<8x8xf32>
    %cst_7 = arith.constant dense<0xFF800000> : vector<8xf32>
    %18 = vector.multi_reduction <maximumf>, %17, %cst_7 [1] : vector<8x8xf32> to vector<8xf32>
    %19 = vector.shape_cast %18 : vector<8xf32> to vector<8x1xf32>
    %20 = vector.broadcast %19 : vector<8x1xf32> to vector<8x8xf32>
    %21 = arith.subf %17, %20 : vector<8x8xf32>
    %22 = math.exp %21 : vector<8x8xf32>
    %cst_8 = arith.constant dense<0.000000e+00> : vector<8xf32>
    %23 = vector.multi_reduction <add>, %22, %cst_8 [1] : vector<8x8xf32> to vector<8xf32>
    %24 = vector.shape_cast %23 : vector<8xf32> to vector<8x1xf32>
    %25 = tpu.reciprocal %24 : vector<8x1xf32> -> vector<8x1xf32>
    %26 = vector.broadcast %25 : vector<8x1xf32> to vector<8x8xf32>
    %27 = arith.mulf %22, %26 : vector<8x8xf32>
    %cst_9 = arith.constant dense<0.000000e+00> : vector<8x8xf32>
    %28 = tpu.matmul %27, %14, %cst_9 {dimension_numbers = #tpu.dot_dimension_numbers<[1], [0], [0], [1], [0, 0, 1, 1], [], []>} : vector<8x8xf32>, vector<8x8xf32>, vector<8x8xf32> -> vector<8x8xf32>
    %29 = vector.extract_strided_slice %6 {offsets = [0, 8], sizes = [8, 8], strides = [1, 1]} : vector<8x32xf32> to vector<8x8xf32>
    %30 = vector.extract_strided_slice %7 {offsets = [0, 8], sizes = [8, 8], strides = [1, 1]} : vector<8x32xf32> to vector<8x8xf32>
    %31 = vector.extract_strided_slice %8 {offsets = [0, 8], sizes = [8, 8], strides = [1, 1]} : vector<8x32xf32> to vector<8x8xf32>
    %cst_10 = arith.constant dense<0.000000e+00> : vector<8x8xf32>
    %32 = tpu.matmul %29, %30, %cst_10 {dimension_numbers = #tpu.dot_dimension_numbers<[1], [1], [0], [0], [0, 0, 1, 0], [], []>} : vector<8x8xf32>, vector<8x8xf32>, vector<8x8xf32> -> vector<8x8xf32>
    %cst_11 = arith.constant -1.000000e+06 : f32
    %33 = vector.broadcast %cst_11 : f32 to vector<8x8xf32>
    %34 = arith.select %11, %32, %33 : vector<8x8xi1>, vector<8x8xf32>
    %cst_12 = arith.constant dense<0xFF800000> : vector<8xf32>
    %35 = vector.multi_reduction <maximumf>, %34, %cst_12 [1] : vector<8x8xf32> to vector<8xf32>
    %36 = vector.shape_cast %35 : vector<8xf32> to vector<8x1xf32>
    %37 = vector.broadcast %36 : vector<8x1xf32> to vector<8x8xf32>
    %38 = arith.subf %34, %37 : vector<8x8xf32>
    %39 = math.exp %38 : vector<8x8xf32>
    %cst_13 = arith.constant dense<0.000000e+00> : vector<8xf32>
    %40 = vector.multi_reduction <add>, %39, %cst_13 [1] : vector<8x8xf32> to vector<8xf32>
    %41 = vector.shape_cast %40 : vector<8xf32> to vector<8x1xf32>
    %42 = tpu.reciprocal %41 : vector<8x1xf32> -> vector<8x1xf32>
    %43 = vector.broadcast %42 : vector<8x1xf32> to vector<8x8xf32>
    %44 = arith.mulf %39, %43 : vector<8x8xf32>
    %cst_14 = arith.constant dense<0.000000e+00> : vector<8x8xf32>
    %45 = tpu.matmul %44, %31, %cst_14 {dimension_numbers = #tpu.dot_dimension_numbers<[1], [0], [0], [1], [0, 0, 1, 1], [], []>} : vector<8x8xf32>, vector<8x8xf32>, vector<8x8xf32> -> vector<8x8xf32>
    %46 = vector.extract_strided_slice %6 {offsets = [0, 16], sizes = [8, 8], strides = [1, 1]} : vector<8x32xf32> to vector<8x8xf32>
    %47 = vector.extract_strided_slice %7 {offsets = [0, 16], sizes = [8, 8], strides = [1, 1]} : vector<8x32xf32> to vector<8x8xf32>
    %48 = vector.extract_strided_slice %8 {offsets = [0, 16], sizes = [8, 8], strides = [1, 1]} : vector<8x32xf32> to vector<8x8xf32>
    %cst_15 = arith.constant dense<0.000000e+00> : vector<8x8xf32>
    %49 = tpu.matmul %46, %47, %cst_15 {dimension_numbers = #tpu.dot_dimension_numbers<[1], [1], [0], [0], [0, 0, 1, 0], [], []>} : vector<8x8xf32>, vector<8x8xf32>, vector<8x8xf32> -> vector<8x8xf32>
    %cst_16 = arith.constant -1.000000e+06 : f32
    %50 = vector.broadcast %cst_16 : f32 to vector<8x8xf32>
    %51 = arith.select %11, %49, %50 : vector<8x8xi1>, vector<8x8xf32>
    %cst_17 = arith.constant dense<0xFF800000> : vector<8xf32>
    %52 = vector.multi_reduction <maximumf>, %51, %cst_17 [1] : vector<8x8xf32> to vector<8xf32>
    %53 = vector.shape_cast %52 : vector<8xf32> to vector<8x1xf32>
    %54 = vector.broadcast %53 : vector<8x1xf32> to vector<8x8xf32>
    %55 = arith.subf %51, %54 : vector<8x8xf32>
    %56 = math.exp %55 : vector<8x8xf32>
    %cst_18 = arith.constant dense<0.000000e+00> : vector<8xf32>
    %57 = vector.multi_reduction <add>, %56, %cst_18 [1] : vector<8x8xf32> to vector<8xf32>
    %58 = vector.shape_cast %57 : vector<8xf32> to vector<8x1xf32>
    %59 = tpu.reciprocal %58 : vector<8x1xf32> -> vector<8x1xf32>
    %60 = vector.broadcast %59 : vector<8x1xf32> to vector<8x8xf32>
    %61 = arith.mulf %56, %60 : vector<8x8xf32>
    %cst_19 = arith.constant dense<0.000000e+00> : vector<8x8xf32>
    %62 = tpu.matmul %61, %48, %cst_19 {dimension_numbers = #tpu.dot_dimension_numbers<[1], [0], [0], [1], [0, 0, 1, 1], [], []>} : vector<8x8xf32>, vector<8x8xf32>, vector<8x8xf32> -> vector<8x8xf32>
    %63 = vector.extract_strided_slice %6 {offsets = [0, 24], sizes = [8, 8], strides = [1, 1]} : vector<8x32xf32> to vector<8x8xf32>
    %64 = vector.extract_strided_slice %7 {offsets = [0, 24], sizes = [8, 8], strides = [1, 1]} : vector<8x32xf32> to vector<8x8xf32>
    %65 = vector.extract_strided_slice %8 {offsets = [0, 24], sizes = [8, 8], strides = [1, 1]} : vector<8x32xf32> to vector<8x8xf32>
    %cst_20 = arith.constant dense<0.000000e+00> : vector<8x8xf32>
    %66 = tpu.matmul %63, %64, %cst_20 {dimension_numbers = #tpu.dot_dimension_numbers<[1], [1], [0], [0], [0, 0, 1, 0], [], []>} : vector<8x8xf32>, vector<8x8xf32>, vector<8x8xf32> -> vector<8x8xf32>
    %cst_21 = arith.constant -1.000000e+06 : f32
    %67 = vector.broadcast %cst_21 : f32 to vector<8x8xf32>
    %68 = arith.select %11, %66, %67 : vector<8x8xi1>, vector<8x8xf32>
    %cst_22 = arith.constant dense<0xFF800000> : vector<8xf32>
    %69 = vector.multi_reduction <maximumf>, %68, %cst_22 [1] : vector<8x8xf32> to vector<8xf32>
    %70 = vector.shape_cast %69 : vector<8xf32> to vector<8x1xf32>
    %71 = vector.broadcast %70 : vector<8x1xf32> to vector<8x8xf32>
    %72 = arith.subf %68, %71 : vector<8x8xf32>
    %73 = math.exp %72 : vector<8x8xf32>
    %cst_23 = arith.constant dense<0.000000e+00> : vector<8xf32>
    %74 = vector.multi_reduction <add>, %73, %cst_23 [1] : vector<8x8xf32> to vector<8xf32>
    %75 = vector.shape_cast %74 : vector<8xf32> to vector<8x1xf32>
    %76 = tpu.reciprocal %75 : vector<8x1xf32> -> vector<8x1xf32>
    %77 = vector.broadcast %76 : vector<8x1xf32> to vector<8x8xf32>
    %78 = arith.mulf %73, %77 : vector<8x8xf32>
    %cst_24 = arith.constant dense<0.000000e+00> : vector<8x8xf32>
    %79 = tpu.matmul %78, %65, %cst_24 {dimension_numbers = #tpu.dot_dimension_numbers<[1], [0], [0], [1], [0, 0, 1, 1], [], []>} : vector<8x8xf32>, vector<8x8xf32>, vector<8x8xf32> -> vector<8x8xf32>
    %80 = tpu.concatenate %28, %45, %62, %79 in 1 : vector<8x8xf32>, vector<8x8xf32>, vector<8x8xf32>, vector<8x8xf32> -> vector<8x32xf32>
    %c0_25 = arith.constant 0 : index
    %c0_26 = arith.constant 0 : index
    %81 = vector.load %arg3[%c0_25, %c0_26] : memref<32x32xf32, #tpu.memory_space<vmem>>, vector<32x32xf32>
    %cst_27 = arith.constant dense<0.000000e+00> : vector<8x32xf32>
    %82 = tpu.matmul %80, %81, %cst_27 {dimension_numbers = #tpu.dot_dimension_numbers<[1], [0], [0], [1], [0, 0, 1, 1], [], []>} : vector<8x32xf32>, vector<32x32xf32>, vector<8x32xf32> -> vector<8x32xf32>
    %83 = arith.addf %82, %1 : vector<8x32xf32>
    %c0_28 = arith.constant 0 : index
    %c0_29 = arith.constant 0 : index
    %84 = vector.load %arg4[%c0_28, %c0_29] : memref<1x32xf32, #tpu.memory_space<vmem>>, vector<1x32xf32>
    %c0_30 = arith.constant 0 : index
    %c0_31 = arith.constant 0 : index
    %85 = vector.load %arg5[%c0_30, %c0_31] : memref<1x32xf32, #tpu.memory_space<vmem>>, vector<1x32xf32>
    %cst_32 = arith.constant dense<0.000000e+00> : vector<8xf32>
    %86 = vector.multi_reduction <add>, %83, %cst_32 [1] : vector<8x32xf32> to vector<8xf32>
    %87 = vector.shape_cast %86 : vector<8xf32> to vector<8x1xf32>
    %cst_33 = arith.constant 3.200000e+01 : f32
    %88 = vector.broadcast %cst_33 : f32 to vector<8x1xf32>
    %89 = arith.divf %87, %88 : vector<8x1xf32>
    %90 = vector.broadcast %89 : vector<8x1xf32> to vector<8x32xf32>
    %91 = arith.subf %83, %90 : vector<8x32xf32>
    %92 = arith.mulf %91, %91 : vector<8x32xf32>
    %cst_34 = arith.constant dense<0.000000e+00> : vector<8xf32>
    %93 = vector.multi_reduction <add>, %92, %cst_34 [1] : vector<8x32xf32> to vector<8xf32>
    %94 = vector.shape_cast %93 : vector<8xf32> to vector<8x1xf32>
    %cst_35 = arith.constant 3.200000e+01 : f32
    %95 = vector.broadcast %cst_35 : f32 to vector<8x1xf32>
    %96 = arith.divf %94, %95 : vector<8x1xf32>
    %cst_36 = arith.constant 9.99999974E-6 : f32
    %97 = vector.broadcast %cst_36 : f32 to vector<8x1xf32>
    %98 = arith.addf %96, %97 : vector<8x1xf32>
    %99 = math.rsqrt %98 : vector<8x1xf32>
    %100 = vector.broadcast %99 : vector<8x1xf32> to vector<8x32xf32>
    %101 = arith.mulf %91, %100 : vector<8x32xf32>
    %102 = vector.broadcast %84 : vector<1x32xf32> to vector<8x32xf32>
    %103 = arith.mulf %101, %102 : vector<8x32xf32>
    %104 = vector.broadcast %85 : vector<1x32xf32> to vector<8x32xf32>
    %105 = arith.addf %103, %104 : vector<8x32xf32>
    %c0_37 = arith.constant 0 : index
    %c0_38 = arith.constant 0 : index
    %c0_39 = arith.constant 0 : index
    %106 = vector.load %arg6[%c0_37, %c0_38, %c0_39] : memref<1x8x32xf32, #tpu.memory_space<vmem>>, vector<1x8x32xf32>
    %107 = vector.shape_cast %106 : vector<1x8x32xf32> to vector<8x32xf32>
    %108 = vector.shape_cast %105 : vector<8x32xf32> to vector<1x8x32xf32>
    tpu.vector_store %arg6[%c0_37, %c0_38, %c0_39], %108 {strides = array<i32>} : memref<1x8x32xf32, #tpu.memory_space<vmem>>, vector<1x8x32xf32>,
    return
  }
  func.func @transform_0(%arg0: i32) -> (i32, i32, i32) {
    %c0_i32 = arith.constant 0 : i32
    %c0_i32_0 = arith.constant 0 : i32
    %c0_i32_1 = arith.constant 0 : i32
    return %arg0, %c0_i32, %c0_i32_0 : i32, i32, i32
  }
  func.func @transform_1(%arg0: i32) -> (i32, i32) {
    %c0_i32 = arith.constant 0 : i32
    %c0_i32_0 = arith.constant 0 : i32
    %c0_i32_1 = arith.constant 0 : i32
    return %c0_i32, %c0_i32_0 : i32, i32
  }
  func.func @transform_2(%arg0: i32) -> (i32, i32) {
    %c0_i32 = arith.constant 0 : i32
    %c0_i32_0 = arith.constant 0 : i32
    %c0_i32_1 = arith.constant 0 : i32
    return %c0_i32, %c0_i32_0 : i32, i32
  }
  func.func @transform_3(%arg0: i32) -> (i32, i32) {
    %c0_i32 = arith.constant 0 : i32
    %c0_i32_0 = arith.constant 0 : i32
    %c0_i32_1 = arith.constant 0 : i32
    return %c0_i32, %c0_i32_0 : i32, i32
  }
  func.func @transform_4(%arg0: i32) -> (i32, i32) {
    %c0_i32 = arith.constant 0 : i32
    %c0_i32_0 = arith.constant 0 : i32
    %c0_i32_1 = arith.constant 0 : i32
    return %c0_i32, %c0_i32_0 : i32, i32
  }
  func.func @transform_5(%arg0: i32) -> (i32, i32, i32) {
    %c0_i32 = arith.constant 0 : i32
    %c0_i32_0 = arith.constant 0 : i32
    %c0_i32_1 = arith.constant 0 : i32
    return %arg0, %c0_i32, %c0_i32_0 : i32, i32, i32
  }
}

</mosaic_0001>

<bundles_post_ra>
// kernel: tpu_custom_call.1
= control target key start
LH: loop header
LB: loop body
LE: loop exit
PB: predicated region body
PF: predicated region fallthrough
CT: control target
= control target key end

     0   :  { %10 = vsyncpa [#allocation3], 0  ;;  %s2013_s0 = inlined_call_operand.hbm [shape: f32[2,8,32], index: 0, kind: input, shape index: {}]   ;;  %s2014_s1 = inlined_call_operand.hbm [shape: f32[32,96], index: 1, kind: input, shape index: {}]   ;;  %s2015_s2 = inlined_call_operand.hbm [shape: f32[32,32], index: 2, kind: input, shape index: {}]   ;;  %s2016_s3 = inlined_call_operand.vmem [shape: f32[1,32], index: 3, kind: input, shape index: {}]   ;;  %s2017_s4 = inlined_call_operand.vmem [shape: f32[1,32], index: 4, kind: input, shape index: {}]   ;;  %s2018_s5 = inlined_call_operand.hbm [shape: f32[2,8,32], index: 5, kind: output, shape index: {}]  }
   0x1   :  { %12 = vsyncpa [#allocation3 + $0x1], 0 }
   0x2   :  { %13 = vsyncpa [#allocation6], 0 }
   0x3   :  { %14 = vsyncpa [#allocation4], 0 }
   0x4   :  { %16 = vsyncpa [#allocation4 + $0x1], 0  ;;  %s1694_s18 = smov 0   ;;  %s1696_s19 = smov 0  }
   0x5   :  { %s1698_s20 = smov 0   ;;  %s1700_s21 = smov 0  }
   0x6 LB: > { %s1715_s22 = sadd.s32 4294967295, %s1639_s21   ;;  %s1247_s23 = sadd.s32 4294967294, %s1639_s21   ;;  %s1639_s21 = sphi %s1700_s21, %s2038_s21   ;;  %s1635_s20 = sphi %s1698_s20, %s2037_s20   ;;  %s1631_s19 = sphi %s1696_s19, %s2036_s19   ;;  %s1627_s18 = sphi %s1694_s18, %s2035_s18  }
   0x7   : > { %p42_p0 = scmp.ne.s32.totalorder %s1631_s19, %s1627_s18  ;;  %p2019_p1 = scmp.eq.s32.totalorder %s1715_s22, 0 }
   0x8   : > { %p156_p3 = scmp.eq.s32.totalorder %s1247_s23, 1  ;;  %p1248_p5 = scmp.ge.s32.totalorder %s1639_s21, 1 }
   0x9   : > { %p1724_p4 = por %p2019_p1, %p42_p0  ;;  %p163_p7 = scmp.lt.s32.totalorder %s1639_s21, 3 }
   0xa   : > { %p1729_p6 = por %p156_p3, %p42_p0  ;;  %s1641_s27 = smov [#allocation5]  }
   0xb   : > { %s2022_s24 = scalar_select %p1724_p4, 1, 0 }
   0xc   : > { %s2023_s25 = scalar_select %p1729_p6, 1, 0 }
   0xd   : > { %p1734_p8 = pnand %p1248_p5, %p163_p7  ;;  %s175_s28 = sshll.u32 %s1641_s27, 4  ;;  %s1738_s28 = int_to_ptr.vmem [resolvable:$true] %s175_s28 }
   0xe   : > { %s1642_s30 = smov [#allocation7]   ;;  %s1483_s9 = scalar_lea.hbm %s2014_s1, 512 }
   0xf   : > { %p1391_p9 = pneg %p1734_p8  ;;  %s188_s6 = sshll.u32 %s1642_s30, 4  ;;  %s1749_s6 = int_to_ptr.vmem [resolvable:$true] %s188_s6 }
  0x10   : > { %p1484_p12 = scmp.ne.s32.totalorder %s2014_s1, %s1483_s9  ;;  %p1490_p5 = scmp.lt.u32.totalorder %s1483_s9, %s2014_s1 }
  0x11   : > { %p1745_p11 = pnand %p1391_p9, %p2019_p1 }
  0x13   : > { %p1485_p13 = pneg %p1745_p11 }
  0x15   : > { %p1486_p0 = pnand %p1485_p13, %p1484_p12 }
  0x17   : > { %p1487_p3 = pneg %p1486_p0 }
  0x19   : > { %p1492_p7 = pnand %p1490_p5, %p1487_p3 }
  0x1b   : > { %1495 = shalt.err (!%p1492_p7)
}
  0x1c   : > { %s1496_s14 = scalar_lea.vmem %s1738_s28, 512  ;;  %p1504_p2 = scmp.lt.s32.totalorder %s1738_s28, %s1738_s28 }
  0x1d   : > { %p1497_p9 = scmp.ne.s32.totalorder %s1738_s28, %s1496_s14  ;;  %p1505_p12 = scmp.lt.s32.totalorder %s1496_s14, %s1496_s14 }
  0x1f   : > { %p1499_p10 = pnand %p1497_p9, %p1485_p13  ;;  %p1506_p0 = por %p1505_p12, %p1504_p2 }
  0x21   : > { %p1500_p1 = pneg %p1499_p10 }
  0x23   : > { %p1507_p6 = pnand %p1506_p0, %p1500_p1 }
  0x25   : > { %1510 = shalt.err (!%p1507_p6)
}
  0x26   : > { %s1643_s15 = smov 128   ;;  %s1644_s16 = smov 8  }
  0x27   : > { %1394 = dma.hbm_to_vmem [thread:$0]  (!%p1745_p11), %s2014_s1, 512, %s1738_s28, [#allocation6], %s1643_s15, %s1643_s15, %s1644_s16  }
  0x28   : > { %s1511_s7 = scalar_lea.hbm %s2015_s2, 512 }
  0x29   : > { %p1512_p2 = scmp.ne.s32.totalorder %s2015_s2, %s1511_s7  ;;  %p1518_p10 = scmp.lt.u32.totalorder %s1511_s7, %s2015_s2 }
  0x2b   : > { %p1514_p1 = pnand %p1512_p2, %p1485_p13 }
  0x2d   : > { %p1515_p6 = pneg %p1514_p1 }
  0x2f   : > { %p1520_p3 = pnand %p1518_p10, %p1515_p6 }
  0x31   : > { %1523 = shalt.err (!%p1520_p3)
}
  0x32   : > { %s1524_s28 = scalar_lea.vmem %s1749_s6, 512  ;;  %p1532_p12 = scmp.lt.s32.totalorder %s1749_s6, %s1749_s6 }
  0x33   : > { %p1525_p5 = scmp.ne.s32.totalorder %s1749_s6, %s1524_s28  ;;  %p1533_p0 = scmp.lt.s32.totalorder %s1524_s28, %s1524_s28 }
  0x35   : > { %p1527_p7 = pnand %p1525_p5, %p1485_p13  ;;  %p1534_p2 = por %p1533_p0, %p1532_p12 }
  0x37   : > { %p1528_p9 = pneg %p1527_p7 }
  0x39   : > { %p1535_p1 = pnand %p1534_p2, %p1528_p9 }
  0x3b   : > { %1538 = shalt.err (!%p1535_p1)
}
  0x3c   : > { %1397 = dma.hbm_to_vmem [thread:$0]  (!%p1745_p11), %s2015_s2, 512, %s1749_s6, [#allocation6], %s1643_s15, %s1643_s15, %s1644_s16  }
  0x3d   : > { %s1804_s14 = sadd.s32 1, %s1639_s21   ;;  %s29_s29 = sadd.s32 1, %s1635_s20 }
  0x3e   : > { %s26_s17 = ssub.s32 %s1639_s21, %s1804_s14  ;;  %p36_p13 = scmp.ne.s32.totalorder %s1635_s20, %s1631_s19 }
  0x3f   : > { %p27_p6 = scmp.eq.s32.totalorder %s26_s17, 0  ;;  %p37_p10 = scmp.eq.s32.totalorder %s1639_s21, 0 }
  0x40   : > { %p2026_p3 = scmp.eq.s32.totalorder %s1715_s22, 1  ;;  %p1408_p7 = scmp.lt.s32.totalorder %s1639_s21, 2 }
  0x41   : > { %s1820_s27 = scalar_select %p27_p6, %s1635_s20, %s29_s29  }
  0x42   : > { %p1814_p5 = por %p2026_p3, %p36_p13  ;;  %p38_p9 = por %p37_p10, %p36_p13 }
  0x43   : > { %s208_s30 = sand.u32 1, %s1635_s20   ;;  %s1253_s6 = sshll.u32 %s1639_s21, 7 }
  0x44   : > { %s2027_s23 = scalar_select %p1814_p5, 1, 0 }
  0x45   : > { %s1252_s7 = sshll.u32 %s208_s30, 3  ;;  %s1827_s8 = scalar_lea.hbm %s2013_s0, %s1253_s6 }
  0x46   : > { %s212_s9 = scalar_lea.vmem [#allocation2], %s1252_s7  ;;  %p1831_p11 = pnand %p1408_p7, %p38_p9 }
  0x47   : > { %s219_s10 = sshll.u32 %s212_s9, 4  ;;  %s209_s28 = scalar_lea.sflag [#allocation3], %s208_s30  ;;  %s1829_s10 = int_to_ptr.vmem [resolvable:$true] %s219_s10 }
  0x48   : > { %s1539_s12 = scalar_lea.hbm %s1827_s8, 128  ;;  %p1541_p0 = pneg %p1831_p11 }
  0x49   : > { %p1540_p12 = scmp.ne.s32.totalorder %s1827_s8, %s1539_s12  ;;  %s1544_s17 = scalar_lea.hbm %s2013_s0, 256 }
  0x4a   : > { %p1545_p13 = scmp.lt.u32.totalorder %s1827_s8, %s2013_s0  ;;  %p1546_p6 = scmp.lt.u32.totalorder %s1544_s17, %s1539_s12 }
  0x4b   : > { %p1542_p2 = pnand %p1541_p0, %p1540_p12  ;;  %p1548_p3 = scmp.lt.u32.totalorder %s1539_s12, %s1827_s8 }
  0x4c   : > { %p1547_p10 = por %p1546_p6, %p1545_p13 }
  0x4d   : > { %p1543_p1 = pneg %p1542_p2 }
  0x4e   : > { %p1549_p7 = por %p1548_p3, %p1547_p10 }
  0x50   : > { %p1550_p9 = pnand %p1549_p7, %p1543_p1 }
  0x52   : > { %1553 = shalt.err (!%p1550_p9)
}
  0x53   : > { %s1554_s30 = scalar_lea.vmem %s1829_s10, 128  ;;  %s1645_s15 = smov [#allocation2]  }
  0x54   : > { %p1555_p12 = scmp.ne.s32.totalorder %s1829_s10, %s1554_s30  ;;  %s1559_s16 = sshll.u32 %s1645_s15, 4  ;;  %s1560_s16 = int_to_ptr.vmem [resolvable:$false] %s1559_s16 }
  0x55   : > { %s1561_s9 = scalar_lea.vmem %s1560_s16, 256  ;;  %p1562_p4 = scmp.lt.s32.totalorder %s1829_s10, %s1560_s16 }
  0x56   : > { %p1557_p2 = pnand %p1555_p12, %p1541_p0  ;;  %p1563_p13 = scmp.lt.s32.totalorder %s1561_s9, %s1554_s30 }
  0x58   : > { %p1558_p5 = pneg %p1557_p2  ;;  %p1564_p6 = por %p1563_p13, %p1562_p4 }
  0x5a   : > { %p1565_p10 = pnand %p1564_p6, %p1558_p5 }
  0x5c   : > { %1568 = shalt.err (!%p1565_p10)
}
  0x5d   : > { %1401 = dma.hbm_to_vmem [thread:$0]  (!%p1831_p11), %s1827_s8, 128, %s1829_s10, %s209_s28  }
  0x5e   : > { %228 = sbr.rel (%p1734_p8) target bundleno = 2420 (0x974), region = 40  ;;  %s1863_s12 = sand.u32 (!%p1734_p8), 1, %s1631_s19  }
  0x5f   : > { %s1255_s13 = sshll.u32 (!%p1734_p8), %s1863_s12, 3  ;;  %s231_s29 = scalar_lea.sflag (!%p1734_p8), [#allocation3], %s1863_s12 }
  0x60   : > { %s234_s17 = scalar_lea.vmem (!%p1734_p8), [#allocation2], %s1255_s13  ;;  %p2029_p4 = scmp.ne.s32.totalorder (!%p1734_p8), %s2022_s24, 0 }
  0x65   : > { %1614 = dma.done.wait (%p2029_p4), %s231_s29, 128  }
  0x66   : > { %1616 = vsyncadd (%p2029_p4), %s231_s29, 4294967168  ;;  %p2030_p5 = scmp.eq.s32.totalorder %s1715_s22, 0 }
  0x68   : > { %1618 = dma.done.wait (%p2030_p5), [#allocation6], 1024   ;;  %p2031_p8 = pmov %p2030_p5 }
  0x69   : > { %v1646_v0 = vmov 0.0|0.0   ;;  %vm1647_vm0 = vmmov 0   ;;  %v1648_v1 = vmov 0.0   ;;  %v270_v2 = vld [vmem:[#allocation5] sm:$0xff]  ;;  %v271_v3 = vld [vmem:[#allocation5 + $0x8] sm:$0xff]  ;;  %v272_v4 = vld [vmem:[#allocation5 + $0x10] sm:$0xff]  ;;  %v349_v17 = vlaneseq }
  0x6a   : > { %1620 = vsyncadd (%p2031_p8), [#allocation6], 4294966272  ;;  %1367 = vmatprep.subr.bf16.mxu0 %v1646_v0  ;;  %1313 = vmatprep.mubr.msk.f32.mxu0 %vm1647_vm0, %v1648_v1  ;;  %v1368_v5 = vpack.c.bf16 %v271_v3, %v270_v2  ;;  %v273_v6 = vld [vmem:[#allocation5 + $0x18] sm:$0xff]  ;;  %vm274_vm1 = vcmask 261120   ;;  %s1649_s24 = smov 64   ;;  %s1650_s26 = smov 96  }
  0x6b   : > { %1316 = vmatprep.subr.mxu1 %v1648_v1  ;;  %1318 = vmatprep.mubr.msk.f32.mxu1 %vm1647_vm0, %v1648_v1  ;;  %v1371_v7 = vpack.c.bf16 %v273_v6, %v272_v4  ;;  %v1884_v8 = vld [vmem:[%s234_s17] sm:$0xff]  ;;  %s1651_s8 = smov 88   ;;  %s1652_s10 = smov 120   ;;  %vm357_vm2 = vcmask 64512   ;;  %v350_v18 = vshrl.u32 %v349_v17, 7  ;;  %v352_v19 = vand.u32 127, %v349_v17 }
  0x6c   : > { %1369 = vmatpush3.bf16.msra.mxu0 %v1368_v5  ;;  %s1653_s11 = smov 80   ;;  %s1654_s28 = smov 72   ;;  %vm1032_vm4 = vcmask 130048   ;;  %vm1034_vm5 = vcmask 195584  }
  0x6d   : > { %1370 = vmatprep.subr.bf16.mxu0 %v1646_v0  ;;  %vm353_vm3 = vcmp.le.s32.totalorder %v352_v19, %v350_v18  ;;  %s1655_s7 = smov 112   ;;  %s1656_s6 = smov 104   ;;  %v1038_v18 = vld [vmem:[#allocation7 + $0x10] sm:$0xff]  ;;  %v1039_v19 = vld [vmem:[#allocation7 + $0x18] sm:$0xff] }
  0x6e   : > { %s1657_s30 = smov 56   ;;  %s1658_s15 = smov 48  }
  0x6f   : > { %s1659_s16 = smov 40   ;;  %s1660_s9 = smov 8  }
  0x70   : > { %1372 = vmatpush3.bf16.msra.mxu0 %v1371_v7  ;;  %s1661_s29 = smov 16   ;;  %s1662_s17 = smov 24  }
  0x71   : > { %1336 = vmatprep.subr.mxu0 %v1648_v1  ;;  %p2032_p0 = scmp.ne.s32.totalorder %s2027_s23, 0 }
  0x73   : > { %1314 = vmatmul.mubr.msk.f32.vlgmr.msra.gmra.mrb[0].mxu0 %vm274_vm1, %v1884_v8 }
  0x74   : > { %1338 = vmatprep.mubr.msk.f32.mxu0 %vm1647_vm0, %v1648_v1 }
 0x146   : > { %v1891_v9 = vpop.f32.mrb[0].mxu0 }
 0x147   : > { %445 = vrot.lane.b32.xlu1 %v1891_v9, %s1649_s24  ;;  %355 = vrot.lane.b32.xlu0 %v1891_v9, %s1650_s26  ;;  %v1315_v10 = vpop.f32.mrb[1].mxu0  ;;  %v348_v11 = vmul.f32 0.35355338, %v1891_v9 }
 0x14b   : > { %523 = vrot.lane.b32.xlu1 %v1891_v9, %s1651_s8 }
 0x14f   : > { %521 = vrot.lane.b32.xlu1 %v348_v11, %s1652_s10 }
 0x153   : > { %689 = vrot.lane.b32.xlu1 %v1891_v9, %s1653_s11  ;;  %s1276_s11 = sshll.u32 %s1715_s22, 7  ;;  %s1663_s22 = smov [#allocation8]  }
 0x1b9   : > { %v446_v12 = vpop.permute.xlu1 %445  ;;  %v356_v13 = vpop.permute.xlu0 %355 }
 0x1ba   : > { %1317 = vmatpush3.xpose.msk.msra.mxu1 %vm357_vm2, %v356_v13 }
 0x1bb   : > { %1321 = vmatprep.subr.mxu1 %v1648_v1 }
 0x1bd   : > { %v524_v14 = vpop.permute.xlu1 %523  ;;  %1319 = vmatmul.mubr.msk.f32.vlgmr.msra.gmra.mrb[0].mxu1 %vm357_vm2, %v348_v11 }
 0x1be   : > { %1322 = vmatpush3.msra.mxu1 %v446_v12  ;;  %1323 = vmatprep.mubr.msk.f32.mxu1 %vm1647_vm0, %v1648_v1 }
 0x1bf   : > { %1326 = vmatprep.subr.mxu1 %v1648_v1 }
 0x1c1   : > { %v522_v15 = vpop.permute.xlu1 %521 }
 0x1c5   : > { %v690_v16 = vpop.permute.xlu1 %689 }
 0x1c6   : > { %1337 = vmatpush3.xpose.msk.msra.mxu0 %vm357_vm2, %v690_v16  ;;  %v1037_v16 = vld [vmem:[#allocation7 + $0x8] sm:$0xff] }
 0x1c7   : > { %1346 = vmatprep.subr.mxu0 %v1648_v1 }
 0x290   : > { %v429_v20 = vpop.f32.mrb[0].mxu1 }
 0x291   : > { %v433_v21 = vsel %vm353_vm3, %v429_v20, -1000000.0  ;;  %v1320_v22 = vpop.f32.mrb[1].mxu1  ;;  %v1377_v20 = vpack.c.bf16 %v1039_v19, %v1038_v18 }
 0x292   : > { %v434_v23 = vsel %vm357_vm2, %v433_v21, -inf }
 0x293   : > { %435 = vmax.xlane.f32.xlu0 %v434_v23 }
 0x2a9   : > { %855 = vrot.lane.b32.xlu0 %v1891_v9, %s1654_s28  ;;  %s268_s28 = scalar_lea.vmem [#allocation8], %s1255_s13  ;;  %s1573_s13 = sshll.u32 %s1663_s22, 4  ;;  %s1574_s13 = int_to_ptr.vmem [resolvable:$false] %s1573_s13 }
 0x320   : > { %v436_v24 = vpop.xlane.xlu0 %435 }
 0x321   : > { %v437_v25 = vsub.f32 %v433_v21, %v436_v24 }
 0x323   : > { %v438_v26 = vmul.f32 1.442695, %v437_v25 }
 0x324   : > { %v856_v31 = vpop.permute.xlu0 %855 }
 0x325   : > { %1465 = vpow2.f32 %v438_v26 }
 0x32f   : > { %v1466_v27 = vpop.eup %1465 }
 0x330   : > { %v440_v28 = vsel %vm357_vm2, %v1466_v27, 0.0 }
 0x331   : > { %441 = vadd.xlane.f32.xlu1 %v440_v28 }
 0x342   : > { %687 = vrot.lane.b32.xlu1 %v348_v11, %s1655_s7  ;;  %s1158_s7 = sshll.u32 %s268_s28, 4  ;;  %s1970_s7 = int_to_ptr.vmem [resolvable:$true] %s1158_s7 }
 0x343   : > { %p1576_p7 = scmp.lt.s32.totalorder %s1970_s7, %s1574_s13 }
 0x346   : > { %853 = vrot.lane.b32.xlu1 %v348_v11, %s1656_s6 }
 0x3be   : > { %v442_v29 = vpop.xlane.xlu1 %441 }
 0x3bf   : > { %1467 = vrcp.f32 %v442_v29 }
 0x3c2   : > { %v688_v30 = vpop.permute.xlu1 %687 }
 0x3c3   : > { %1339 = vmatmul.mubr.msk.f32.vlgmr.msra.gmra.mrb[2].mxu0 %vm357_vm2, %v688_v30 }
 0x3c4   : > { %1347 = vmatpush3.xpose.msk.msra.mxu0 %vm357_vm2, %v856_v31  ;;  %1348 = vmatprep.mubr.msk.f32.mxu0 %vm1647_vm0, %v1648_v1 }
 0x3c5   : > { %1373 = vmatprep.subr.bf16.mxu0 %v1646_v0 }
 0x3c6   : > { %v854_v32 = vpop.permute.xlu1 %853 }
 0x3c7   : > { %1349 = vmatmul.mubr.msk.f32.vlgmr.msra.gmra.mrb[4].mxu0 %vm357_vm2, %v854_v32 }
 0x3c8   : > { %1364 = vmatprep.mubr.msk.f32.mxu0 %vm1647_vm0, %v1648_v1 }
 0x3c9   : > { %v1468_v33 = vpop.eup %1467 }
 0x3ca   : > { %v444_v34 = vmul.f32 %v1468_v33, %v1466_v27 }
 0x3cc   : > { %1324 = vmatmul.mubr.msk.f32.vlgmr.msra.gmra.mrb[2].mxu1 %vm357_vm2, %v444_v34 }
 0x3cd   : > { %1327 = vmatpush3.xpose.msk.msra.mxu1 %vm357_vm2, %v524_v14  ;;  %1328 = vmatprep.mubr.msk.f32.mxu1 %vm1647_vm0, %v1648_v1 }
 0x3ce   : > { %1331 = vmatprep.subr.mxu1 %v1648_v1 }
 0x3d0   : > { %1329 = vmatmul.mubr.msk.f32.vlgmr.msra.gmra.mrb[4].mxu1 %vm357_vm2, %v522_v15  ;;  %v1036_v15 = vld [vmem:[#allocation7] sm:$0xff] }
 0x3d1   : > { %1333 = vmatprep.mubr.msk.f32.mxu1 %vm1647_vm0, %v1648_v1  ;;  %v1374_v17 = vpack.c.bf16 %v1037_v16, %v1036_v15 }
 0x3d3   : > { %1375 = vmatpush3.bf16.msra.mxu0 %v1374_v17 }
 0x3d4   : > { %1376 = vmatprep.subr.bf16.mxu0 %v1646_v0 }
 0x3d7   : > { %1378 = vmatpush3.bf16.msra.mxu0 %v1377_v20 }
 0x496   : > { %v761_v35 = vpop.f32.mrb[2].mxu0 }
 0x497   : > { %v765_v36 = vsel %vm353_vm3, %v761_v35, -1000000.0  ;;  %v1340_v37 = vpop.f32.mrb[3].mxu0 }
 0x498   : > { %v766_v38 = vsel %vm357_vm2, %v765_v36, -inf }
 0x499   : > { %767 = vmax.xlane.f32.xlu0 %v766_v38 }
 0x49a   : > { %v927_v39 = vpop.f32.mrb[4].mxu0 }
 0x49b   : > { %v1350_v40 = vpop.f32.mrb[5].mxu0  ;;  %v931_v47 = vsel %vm353_vm3, %v927_v39, -1000000.0 }
 0x49c   : > { %v932_v48 = vsel %vm357_vm2, %v931_v47, -inf }
 0x49f   : > { %v1928_v41 = vpop.f32.mrb[2].mxu1 }
 0x4a0   : > { %v1325_v42 = vpop.f32.mrb[3].mxu1 }
 0x4a3   : > { %v595_v43 = vpop.f32.mrb[4].mxu1 }
 0x4a4   : > { %v599_v44 = vsel %vm353_vm3, %v595_v43, -1000000.0  ;;  %v1330_v45 = vpop.f32.mrb[5].mxu1  ;;  %v1273_v43 = vld [vmem:[%s2016_s3] ss:$0 sm:$0xff] }
 0x4a5   : > { %v600_v46 = vsel %vm357_vm2, %v599_v44, -inf  ;;  %v1274_v45 = vld [vmem:[%s2017_s4] ss:$0 sm:$0xff] }
 0x4a6   : > { %601 = vmax.xlane.f32.xlu1 %v600_v46 }
 0x4aa   : > { %933 = vmax.xlane.f32.xlu1 %v932_v48 }
 0x526   : > { %v768_v49 = vpop.xlane.xlu0 %767 }
 0x527   : > { %v769_v50 = vsub.f32 %v765_v36, %v768_v49 }
 0x529   : > { %v770_v51 = vmul.f32 1.442695, %v769_v50 }
 0x52b   : > { %1469 = vpow2.f32 %v770_v51 }
 0x533   : > { %v602_v52 = vpop.xlane.xlu1 %601 }
 0x534   : > { %v603_v60 = vsub.f32 %v599_v44, %v602_v52 }
 0x535   : > { %v1470_v53 = vpop.eup %1469 }
 0x536   : > { %v772_v54 = vsel %vm357_vm2, %v1470_v53, 0.0  ;;  %v604_v61 = vmul.f32 1.442695, %v603_v60 }
 0x537   : > { %773 = vadd.xlane.f32.xlu1 %v772_v54  ;;  %v934_v55 = vpop.xlane.xlu1 %933 }
 0x538   : > { %v935_v56 = vsub.f32 %v931_v47, %v934_v55 }
 0x53a   : > { %v936_v57 = vmul.f32 1.442695, %v935_v56 }
 0x53c   : > { %1471 = vpow2.f32 %v936_v57 }
 0x53d   : > { %1473 = vpow2.f32 %v604_v61 }
 0x546   : > { %v1472_v58 = vpop.eup %1471 }
 0x547   : > { %v938_v59 = vsel %vm357_vm2, %v1472_v58, 0.0  ;;  %v1474_v62 = vpop.eup %1473 }
 0x548   : > { %611 = vrot.lane.b32.xlu1 %v1891_v9, %s1657_s30  ;;  %939 = vadd.xlane.f32.xlu0 %v938_v59  ;;  %v606_v63 = vsel %vm357_vm2, %v1474_v62, 0.0 }
 0x55e   : > { %777 = vrot.lane.b32.xlu0 %v1891_v9, %s1658_s15  ;;  %s1968_s15 = scalar_lea.hbm %s2018_s5, %s1276_s11 }
 0x56c   : > { %607 = vadd.xlane.f32.xlu1 %v606_v63 }
 0x57d   : > { %943 = vrot.lane.b32.xlu1 %v1891_v9, %s1659_s16  ;;  %s1145_s16 = scalar_lea.sflag [#allocation4], %s1863_s12 }
 0x5c4   : > { %v774_v2 = vpop.xlane.xlu1 %773 }
 0x5c8   : > { %v612_v3 = vpop.permute.xlu1 %611 }
 0x5c9   : > { %1332 = vmatpush3.msra.mxu1 %v612_v3 }
 0x5ca   : > { %1341 = vmatprep.subr.mxu1 %v1648_v1 }
 0x5d5   : > { %v940_v5 = vpop.xlane.xlu0 %939 }
 0x5d9   : > { %v778_v11 = vpop.permute.xlu0 %777 }
 0x5f9   : > { %v608_v4 = vpop.xlane.xlu1 %607 }
 0x5fa   : > { %1475 = vrcp.f32 %v608_v4 }
 0x5fb   : > { %1477 = vrcp.f32 %v774_v2 }
 0x5fc   : > { %1479 = vrcp.f32 %v940_v5 }
 0x5fd   : > { %v944_v13 = vpop.permute.xlu1 %943 }
 0x604   : > { %v1476_v6 = vpop.eup %1475 }
 0x605   : > { %v610_v7 = vmul.f32 %v1476_v6, %v1474_v62  ;;  %v1478_v10 = vpop.eup %1477 }
 0x606   : > { %v776_v9 = vmul.f32 %v1478_v10, %v1470_v53  ;;  %v1480_v12 = vpop.eup %1479 }
 0x607   : > { %1334 = vmatmul.mubr.msk.f32.vlgmr.msra.gmra.mrb[6].mxu1 %vm357_vm2, %v610_v7  ;;  %v942_v14 = vmul.f32 %v1480_v12, %v1472_v58 }
 0x608   : > { %1342 = vmatpush3.msra.mxu1 %v778_v11  ;;  %1343 = vmatprep.mubr.msk.f32.mxu1 %vm1647_vm0, %v1648_v1 }
 0x609   : > { %1351 = vmatprep.subr.mxu1 %v1648_v1 }
 0x60b   : > { %1344 = vmatmul.mubr.msk.f32.vlgmr.msra.gmra.mrb[8].mxu1 %vm357_vm2, %v776_v9 }
 0x60c   : > { %1352 = vmatpush3.msra.mxu1 %v944_v13  ;;  %1353 = vmatprep.mubr.msk.f32.mxu1 %vm1647_vm0, %v1648_v1 }
 0x60f   : > { %1354 = vmatmul.mubr.msk.f32.vlgmr.msra.gmra.mrb[10].mxu1 %vm357_vm2, %v942_v14 }
 0x6da   : > { %v683_v21 = vpop.f32.mrb[6].mxu1 }
 0x6db   : > { %1020 = vrot.lane.b32.xlu1 %v683_v21, %s1660_s9  ;;  %v1335_v22 = vpop.f32.mrb[7].mxu1  ;;  %s1569_s9 = scalar_lea.vmem %s1970_s7, 128 }
 0x6dc   : > { %p1570_p11 = scmp.ne.s32.totalorder %s1970_s7, %s1569_s9 }
 0x6de   : > { %v849_v23 = vpop.f32.mrb[8].mxu1  ;;  %p1571_p1 = pnand %p1570_p11, %p2032_p0 }
 0x6df   : > { %1024 = vrot.lane.b32.xlu0 %v849_v23, %s1661_s29  ;;  %v1345_v1 = vpop.f32.mrb[9].mxu1  ;;  %s1575_s29 = scalar_lea.vmem %s1574_s13, 256 }
 0x6e0   : > { %p1572_p3 = pneg %p1571_p1  ;;  %p1577_p9 = scmp.lt.s32.totalorder %s1575_s29, %s1569_s9 }
 0x6e2   : > { %v1015_v24 = vpop.f32.mrb[10].mxu1  ;;  %p1578_p12 = por %p1577_p9, %p1576_p7 }
 0x6e3   : > { %1028 = vrot.lane.b32.xlu1 %v1015_v24, %s1662_s17  ;;  %v1355_v25 = vpop.f32.mrb[11].mxu1 }
 0x6e4   : > { %p1579_p2 = pnand %p1578_p12, %p1572_p3 }
 0x74d   : > { %v1021_v26 = vpop.permute.xlu1 %1020 }
 0x74e   : > { %v1031_v0 = vsel %vm357_vm2, %v1928_v41, %v1021_v26 }
 0x751   : > { %v1025_v27 = vpop.permute.xlu0 %1024 }
 0x752   : > { %v1033_v28 = vsel %vm1032_vm4, %v1031_v0, %v1025_v27 }
 0x755   : > { %v1029_v29 = vpop.permute.xlu1 %1028 }
 0x756   : > { %v1035_v30 = vsel %vm1034_vm5, %v1033_v28, %v1029_v29 }
 0x757   : > { %1365 = vmatmul.mubr.msk.f32.vlgmr.msra.gmra.mrb[6].mxu0 %vm274_vm1, %v1035_v30 }
 0x82a   : > { %v1109_v31 = vpop.f32.mrb[6].mxu0 }
 0x82b   : > { %v1110_v32 = vadd.f32 %v1109_v31, %v1884_v8  ;;  %v1366_v33 = vpop.f32.mrb[7].mxu0 }
 0x82d   : > { %v1115_v34 = vsel %vm274_vm1, %v1110_v32, 0.0 }
 0x82e   : > { %1116 = vadd.xlane.f32.xlu0 %v1115_v34 }
 0x8bb   : > { %v1117_v35 = vpop.xlane.xlu0 %1116 }
 0x8bc   : > { %v1119_v36 = vmul.f32 0.03125, %v1117_v35 }
 0x8be   : > { %v1120_v37 = vsub.f32 %v1110_v32, %v1119_v36 }
 0x8c0   : > { %v1121_v38 = vmul.f32 %v1120_v37, %v1120_v37 }
 0x8c2   : > { %v1122_v39 = vsel %vm274_vm1, %v1121_v38, 0.0 }
 0x8c3   : > { %1123 = vadd.xlane.f32.xlu1 %v1122_v39 }
 0x950   : > { %v1124_v40 = vpop.xlane.xlu1 %1123 }
 0x951   : > { %v1125_v41 = vmul.f32 0.03125, %v1124_v40 }
 0x953   : > { %v1126_v42 = vadd.f32 1e-05, %v1125_v41 }
 0x955   : > { %1481 = vrsqrt.f32 %v1126_v42 }
 0x95f   : > { %v1482_v8 = vpop.eup %1481 }
 0x960   : > { %v1128_v44 = vmul.f32 %v1482_v8, %v1120_v37 }
 0x962   : > { %v1135_v46 = vmul.f32 %v1273_v43, %v1128_v44 }
 0x964   : > { %v1142_v47 = vadd.f32 %v1274_v45, %v1135_v46 }
 0x966   : > { %1143 = vst.msk [vmem:[%s268_s28] sm:$0xff] %vm274_vm1, %v1142_v47 }
 0x967   : > { %1582 = shalt.err (!%p1579_p2)
}
 0x968   : > { %s1583_s12 = scalar_lea.hbm %s1968_s15, 128  ;;  %s1587_s26 = scalar_lea.hbm %s2018_s5, 256 }
 0x969   : > { %p1584_p13 = scmp.ne.s32.totalorder %s1968_s15, %s1583_s12  ;;  %p1588_p4 = scmp.lt.u32.totalorder %s1968_s15, %s2018_s5 }
 0x96a   : > { %p1589_p5 = scmp.lt.u32.totalorder %s1587_s26, %s1583_s12  ;;  %p1591_p11 = scmp.lt.u32.totalorder %s1583_s12, %s1968_s15 }
 0x96b   : > { %p1585_p6 = pnand %p1584_p13, %p2032_p0 }
 0x96c   : > { %p1590_p8 = por %p1589_p5, %p1588_p4 }
 0x96d   : > { %p1586_p10 = pneg %p1585_p6 }
 0x96e   : > { %p1592_p1 = por %p1591_p11, %p1590_p8 }
 0x970   : > { %p1593_p3 = pnand %p1592_p1, %p1586_p10 }
 0x972   : > { %1596 = shalt.err (!%p1593_p3)
}
 0x973   : > { %1389 = dma.vmem_to_hbm [thread:$0]  (%p2032_p0), %s1970_s7, 128, %s1968_s15, %s1145_s16  }
 0x974 PF: > { %s1170_s11 = sand.u32 1, %s1627_s18   ;;  %p2033_p7 = scmp.ne.s32.totalorder %s2023_s25, 0 }
 0x975   : > { %p2034_p9 = scmp.ge.s32.totalorder %s1639_s21, 2  ;;  %s1171_s28 = scalar_lea.sflag [#allocation4], %s1170_s11 }
 0x977   : > { %p1403_p12 = pnand %p2034_p9, %p2033_p7 }
 0x979   : > { %1622 = dma.done.wait (!%p1403_p12), %s1171_s28, 128  }
 0x97a   : > { %1624 = vsyncadd (!%p1403_p12), %s1171_s28, 4294967168  ;;  %p19_p2 = scmp.ge.s32.totalorder %s1804_s14, 4   ;;  %s2035_s18 = smov %s1631_s19 }
 0x97b   : > { %s2036_s19 = smov %s1635_s20  ;;  %s2037_s20 = smov %s1820_s27 }
 0x97c   : > { %s2038_s21 = smov %s1804_s14  ;;  %21 = sbr.rel (!%p19_p2) target bundleno = 6 (0x6), region = 93 }
 0x983   :  { %1176 = vsyncpa [#allocation3], 1 }
 0x984   :  { %1178 = vsyncpa [#allocation3 + $0x1], 1 }
 0x985   :  { %1179 = vsyncpa [#allocation6], 1 }
 0x986   :  { %1180 = vsyncpa [#allocation4], 1 }
 0x987   :  { %1182 = vsyncpa [#allocation4 + $0x1], 1 }

</bundles_post_ra>
